<compile_context>
chip_gen: v7x
topology: tpu7x:2x2x1
jax: 0.10.0
libtpu: 0.0.40
codegen_flags: <defaults>
</compile_context>

<pallas_src>
import jax
import jax.numpy as jnp
import numpy as np
from jax.experimental import pallas as pl
from jax.experimental.pallas import tpu as pltpu

_LANE = 128


def _identity_copy_kernel(x_ref, o_ref):
    # Pure pass-through: copy the VMEM tile to the output tile.
    o_ref[...] = x_ref[...]


def _target_block_bytes():
    """Generation-aware block target: ~1/16 of physical VMEM, clamped to [1, 8] MiB.

    128 MiB (v5e/v6e) -> 8 MiB blocks; 64 MiB (v7x) -> 4 MiB blocks.
    """
    try:
        cap = int(pltpu.get_tpu_info().vmem_capacity_bytes)
    except Exception:  # conservative fallback if the query is unavailable
        cap = 64 << 20
    return int(min(8 << 20, max(1 << 20, cap // 16)))


def _pick_block_rows(rows, row_bytes, itemsize, target_block_bytes):
    """Rows per block: a multiple of the dtype's sublane pack, ~target bytes,
    and >= 2 grid steps for non-tiny inputs (so both v7x TCs drive DMA)."""
    pack = max(1, 32 // max(itemsize, 1))  # 8 for f32, 16 for bf16, 32 for int8/fp8
    blk = max(1, target_block_bytes // max(row_bytes, 1))
    blk = max(pack, (blk // pack) * pack)  # round down to a pack multiple
    if blk >= rows:
        if rows >= 2 * pack:
            # Whole array would fit one block; split into two so both v7x
            # TensorCores get work (ragged last block is masked by cdiv tiling).
            half = -(-rows // 2)
            blk = min(rows, ((half + pack - 1) // pack) * pack)
        else:
            blk = rows  # full-extent row dim is always a legal block dim
    return blk


def _identity_copy(x):
    """Materialized Identity: tiled HBM->VMEM->HBM copy at near HBM roofline."""
    orig_shape = x.shape
    n = x.size
    if n == 0:
        return x

    itemsize = jnp.dtype(x.dtype).itemsize

    if n % _LANE == 0:
        # Lane-dense view (metadata-only reshape): full-width, unmasked stores.
        c = _LANE
        while n % (c * 2) == 0 and c * 2 <= 1024 and n // (c * 2) >= 8:
            c *= 2
        r = n // c
        x2 = jnp.reshape(x, (r, c))
        block_rows = _pick_block_rows(r, c * itemsize, itemsize, _target_block_bytes())
        grid = (pl.cdiv(r, block_rows),)
    else:
        # No multiple-of-128 factorization of n exists; use one full-array block
        # so block_shape == array shape (exempt from the (8,128) rule).
        if x.ndim >= 2:
            x2 = jnp.reshape(x, (n // orig_shape[-1], orig_shape[-1]))
        else:
            x2 = jnp.reshape(x, (1, n))
        r, c = x2.shape
        block_rows = r
        grid = (1,)

    block_bytes = block_rows * c * itemsize
    # Footprint ~= 4x block (double-buffered in + out) plus headroom.  Raise the
    # scoped VMEM limit explicitly (v5e default is 16 MiB) but stay well under
    # v7x's 64 MiB physical VMEM.
    vmem_limit = int(min(56 << 20, max(32 << 20, 5 * block_bytes)))

    out2 = pl.pallas_call(
        _identity_copy_kernel,
        out_shape=jax.ShapeDtypeStruct((r, c), x2.dtype),
        grid=grid,
        in_specs=[pl.BlockSpec((block_rows, c), lambda i: (i, 0))],
        out_specs=pl.BlockSpec((block_rows, c), lambda i: (i, 0)),
        compiler_params=pltpu.CompilerParams(
            dimension_semantics=("parallel",),
            vmem_limit_bytes=vmem_limit,
        ),
    )(x2)

    return jnp.reshape(out2, orig_shape)


def identity_forward(x, mask=None, memory=None, *, materialize=False):
    """Pallas implementation of Identity.forward: returns x unchanged.

    The optimal Identity is no kernel at all (0 bytes of HBM traffic), so by
    default this simply returns `x`.  Pass materialize=True if a distinct
    output buffer is required; that path runs the tiled Pallas copy kernel.
    `mask` and `memory` match the PyTorch signature but are ignored.
    """
    del mask, memory  # Identity ignores them.
    if not materialize:
        return x
    return _identity_copy(x)


if __name__ == "__main__":
    # Small shapes consistent with an RNN-style forward: x is (T, B, H).
    T, B, H = 8, 2, 32
    key = jax.random.PRNGKey(0)

    x = jax.random.normal(key, (T, B, H), dtype=jnp.float32)
    lengths = jnp.array([7, 5], dtype=jnp.int32)
    mask = jnp.arange(T)[None, :] >= lengths[:, None]  # (B, T) bool — ignored by Identity

    # 1) Optimal path: zero-copy pass-through (the module is `return x`).
    out = identity_forward(x, mask=mask, memory=None)
    out = jax.block_until_ready(out)
    np.testing.assert_array_equal(np.asarray(out), np.asarray(x))
    assert out.shape == x.shape and out.dtype == x.dtype

    # 2) Materialized path: exercise the Pallas copy kernel explicitly.
    out_copy = identity_forward(x, mask=mask, memory=None, materialize=True)
    out_copy = jax.block_until_ready(out_copy)
    np.testing.assert_array_equal(np.asarray(out_copy), np.asarray(x))
    assert out_copy.shape == x.shape and out_copy.dtype == x.dtype

    print("KERNEL_OK")
</pallas_src>

<mosaic_0001>
module attributes {stable_mosaic.version = 11 : i64} {
  func.func @_identity_copy_kernel(%arg0: i32, %arg1: memref<4x128xf32, #tpu.memory_space<vmem>>, %arg2: memref<4x128xf32, #tpu.memory_space<vmem>>) attributes {dimension_semantics = [#tpu.dimension_semantics<parallel>], iteration_bounds = array<i64: 1>, scalar_prefetch = 0 : i64, scratch_operands = 0 : i64, tpu.core_type = #tpu.core_type<tc>, window_params = [{transform_indices = @transform_0, window_bounds = array<i64: 4, 128>}, {transform_indices = @transform_1, window_bounds = array<i64: 4, 128>}]} {
    %c0 = arith.constant 0 : index
    %c0_0 = arith.constant 0 : index
    %0 = vector.load %arg1[%c0, %c0_0] : memref<4x128xf32, #tpu.memory_space<vmem>>, vector<4x128xf32>
    %c0_1 = arith.constant 0 : index
    %c0_2 = arith.constant 0 : index
    %1 = vector.load %arg2[%c0_1, %c0_2] : memref<4x128xf32, #tpu.memory_space<vmem>>, vector<4x128xf32>
    tpu.vector_store %arg2[%c0_1, %c0_2], %0 {strides = array<i32>} : memref<4x128xf32, #tpu.memory_space<vmem>>, vector<4x128xf32>,
    return
  }
  func.func @transform_0(%arg0: i32) -> (i32, i32) {
    %c0_i32 = arith.constant 0 : i32
    %c0_i32_0 = arith.constant 0 : i32
    return %arg0, %c0_i32 : i32, i32
  }
  func.func @transform_1(%arg0: i32) -> (i32, i32) {
    %c0_i32 = arith.constant 0 : i32
    %c0_i32_0 = arith.constant 0 : i32
    return %arg0, %c0_i32 : i32, i32
  }
}

</mosaic_0001>

<bundles_post_ra>
// kernel: tpu_custom_call.1
= control target key start
LH: loop header
LB: loop body
LE: loop exit
PB: predicated region body
PF: predicated region fallthrough
CT: control target
= control target key end

     0   :  { %6 = vsyncpa [#allocation3], 0  ;;  %s124_s0 = inlined_call_operand.hbm [shape: f32[4,128], index: 0, kind: input, shape index: {}]   ;;  %s125_s1 = inlined_call_operand.hbm [shape: f32[4,128], index: 1, kind: output, shape index: {}]  }
   0x1   :  { %7 = vsyncpa [#allocation4], 0  ;;  %s88_s6 = smov [#allocation2]   ;;  %s40_s10 = scalar_lea.hbm %s124_s0, 64 }
   0x2   :  { %s14_s7 = sshll.u32 %s88_s6, 4  ;;  %p41_p0 = scmp.ne.s32.totalorder %s124_s0, %s40_s10  ;;  %s15_s7 = int_to_ptr.vmem [resolvable:$true] %s14_s7 }
   0x3   :  { %p44_p1 = scmp.lt.u32.totalorder %s40_s10, %s124_s0 }
   0x5   :  { %p46_p2 = pnand %p44_p1, %p41_p0 }
   0x7   :  { %49 = shalt.err (!%p46_p2)
}
   0x8   :  { %s50_s15 = scalar_lea.vmem %s15_s7, 64  ;;  %p55_p4 = scmp.lt.s32.totalorder %s15_s7, %s15_s7 }
   0x9   :  { %p51_p3 = scmp.ne.s32.totalorder %s15_s7, %s50_s15  ;;  %p56_p5 = scmp.lt.s32.totalorder %s50_s15, %s50_s15 }
   0xb   :  { %p57_p6 = por %p56_p5, %p55_p4 }
   0xd   :  { %p58_p7 = pnand %p57_p6, %p51_p3 }
   0xf   :  { %61 = shalt.err (!%p58_p7)
}
  0x10   :  { %17 = dma.hbm_to_vmem [thread:$0]  %s124_s0, 64, %s15_s7, [#allocation3]  }
  0x11   :  { %84 = dma.done.wait [#allocation3], 64  }
  0x12   :  { %85 = vsyncadd [#allocation3], 4294967232  ;;  %s89_s18 = smov [#allocation5]   ;;  %v21_v0 = vld [vmem:[#allocation2] sm:$0xf] }
  0x13   :  { %s29_s19 = sshll.u32 %s89_s18, 4  ;;  %22 = vst [vmem:[#allocation5] sm:$0xf] %v21_v0  ;;  %s30_s19 = int_to_ptr.vmem [resolvable:$true] %s29_s19 }
  0x14   :  { %s62_s20 = scalar_lea.vmem %s30_s19, 64  ;;  %p67_p9 = scmp.lt.s32.totalorder %s30_s19, %s30_s19 }
  0x15   :  { %p63_p8 = scmp.ne.s32.totalorder %s30_s19, %s62_s20  ;;  %p68_p10 = scmp.lt.s32.totalorder %s62_s20, %s62_s20 }
  0x17   :  { %p69_p11 = por %p68_p10, %p67_p9 }
  0x19   :  { %p70_p12 = pnand %p69_p11, %p63_p8 }
  0x1b   :  { %73 = shalt.err (!%p70_p12)
}
  0x1c   :  { %s74_s23 = scalar_lea.hbm %s125_s1, 64 }
  0x1d   :  { %p75_p13 = scmp.ne.s32.totalorder %s125_s1, %s74_s23  ;;  %p78_p0 = scmp.lt.u32.totalorder %s74_s23, %s125_s1 }
  0x1f   :  { %p80_p1 = pnand %p78_p0, %p75_p13 }
  0x21   :  { %83 = shalt.err (!%p80_p1)
}
  0x22   :  { %32 = dma.vmem_to_hbm [thread:$0]  %s30_s19, 64, %s125_s1, [#allocation4]  }
  0x23   :  { %86 = dma.done.wait [#allocation4], 64  }
  0x24   :  { %87 = vsyncadd [#allocation4], 4294967232 }
  0x25   :  { %36 = vsyncpa [#allocation3], 1 }
  0x26   :  { %37 = vsyncpa [#allocation4], 1 }

</bundles_post_ra>
